<compile_context>
chip_gen: v5e
topology: v5e:2x2
jax: 0.10.0
libtpu: 0.0.40
codegen_flags: <defaults>
</compile_context>

<pallas_src>
import jax
import jax.numpy as jnp
import numpy as np
from jax.experimental import pallas as pl
from jax.experimental.pallas import tpu as pltpu

LN_EPS = 1e-5          # torch.nn.LayerNorm default
PACK_LANES = 128       # lane-dense packed output width


# --------------------------- fused forward kernel ---------------------------
def _segcn_fused_kernel(hidden_ref, cls_ref, gamma_ref, beta_ref, wop_ref,
                        bop_ref, sent_ref, adj_ref, w1_ref, b1_ref, w2_ref,
                        b2_ref, left_ref, alen_ref, wfc_ref, bfc_ref,
                        packed_ref, x_buf, ra_buf):
    B, L, D = hidden_ref.shape
    N = adj_ref.shape[-1]
    P = wfc_ref.shape[-1]

    # ---- LayerNorm + ReLU over the whole (B, L, D) slab ---------------------
    h = hidden_ref[...]                                   # (B, L, D)
    mean = jnp.mean(h, axis=-1, keepdims=True)
    c = h - mean                                          # centered, reused
    var = jnp.mean(c * c, axis=-1, keepdims=True)
    ln = c * jax.lax.rsqrt(var + LN_EPS) * gamma_ref[...] + beta_ref[...]
    text_out = jnp.maximum(ln, 0.0)                       # dropout = identity

    # ---- opinion head on raw hidden as a VPU lane reduction (no MXU) -------
    op_logits = jnp.sum(h * wop_ref[...], axis=-1) + bop_ref[...]   # (B, L)
    output_op = jax.nn.sigmoid(op_logits)                           # (B, L)

    # ---- aspect mask over graph nodes (2 sentiment + L-1 word nodes) -------
    node_j = (jax.lax.broadcasted_iota(jnp.int32, (B, N), 1) - 2
              ).astype(jnp.float32)                       # word position index
    left = left_ref[...]                                  # (B, 1)
    alen = alen_ref[...]                                  # (B, 1)
    node_mask = ((node_j >= left) &
                 (node_j <= left + alen - 1.0)).astype(jnp.float32)  # (B, N)

    adj = adj_ref[...]                                    # (B, N, N)
    inv_denom = pl.reciprocal(jnp.sum(adj, axis=-1, keepdims=True) + 1.0,
                              approx=True)                # (B, N, 1)

    w1 = w1_ref[...]; b1 = b1_ref[...]
    w2 = w2_ref[...]; b2 = b2_ref[...]

    # sentiment nodes are batch-invariant: write them into the node buffer once
    x_buf[0:2, :] = sent_ref[...]

    # ---- per-batch 2-layer GCN + masked pooling (B tiny -> static unroll) ---
    for b in range(B):
        x_buf[2:, :] = text_out[b, 1:, :]                 # word nodes
        x = x_buf[...]                                    # (N, D)
        a = adj[b]                                        # (N, N)
        idn = inv_denom[b]                                # (N, 1)
        o1 = jnp.maximum(
            jnp.dot(a, jnp.dot(x, w1, preferred_element_type=jnp.float32),
                    preferred_element_type=jnp.float32) * idn + b1, 0.0)
        o2 = jnp.maximum(
            jnp.dot(a, jnp.dot(o1, w2, preferred_element_type=jnp.float32),
                    preferred_element_type=jnp.float32) * idn + b2, 0.0)
        # masked sum over nodes == (1,N) @ (N,D)
        ra_buf[b:b + 1, :] = jnp.dot(node_mask[b:b + 1, :], o2,
                                     preferred_element_type=jnp.float32)

    # TODO(synk): aspect_len == 0 would make this inf/NaN; inputs guarantee >=1.
    ra = ra_buf[...] * pl.reciprocal(alen, approx=True)   # (B, D)

    # ---- final classifier: fc(concat([cls, ra])) via split weight ----------
    logits = (jnp.dot(cls_ref[...], wfc_ref[0:D, :],
                      preferred_element_type=jnp.float32)
              + jnp.dot(ra, wfc_ref[D:, :],
                        preferred_element_type=jnp.float32)
              + bfc_ref[...])                             # (B, P)

    # ---- single lane-dense packed output: [logits | output_op | zeros] -----
    pad = jnp.zeros((B, packed_ref.shape[-1] - P - L), jnp.float32)
    packed_ref[...] = jnp.concatenate([logits, output_op, pad], axis=-1)


def segcn_bert_heads(hidden, cls, ln_gamma, ln_beta, w_op, b_op, sent_embed,
                     adj, w_gc1, b_gc1, w_gc2, b_gc2, left_len, aspect_len,
                     w_fc, b_fc):
    """Everything after the BERT encoder, in one pallas_call."""
    B, L, D = hidden.shape
    N = adj.shape[-1]
    P = w_fc.shape[-1]
    pack_w = PACK_LANES * pl.cdiv(P + L, PACK_LANES)

    packed = pl.pallas_call(
        _segcn_fused_kernel,
        out_shape=jax.ShapeDtypeStruct((B, pack_w), jnp.float32),
        scratch_shapes=[pltpu.VMEM((N, D), jnp.float32),   # graph-node buffer
                        pltpu.VMEM((B, D), jnp.float32)],  # pooled ra buffer
    )(hidden.astype(jnp.float32), cls.astype(jnp.float32),
      ln_gamma.reshape(1, D), ln_beta.reshape(1, D),
      w_op.reshape(1, D), b_op.reshape(1, 1),
      sent_embed.astype(jnp.float32), adj.astype(jnp.float32),
      w_gc1, b_gc1.reshape(1, D), w_gc2, b_gc2.reshape(1, D),
      left_len.astype(jnp.float32).reshape(B, 1),
      aspect_len.astype(jnp.float32).reshape(B, 1),
      w_fc, b_fc.reshape(1, P))

    output = packed[:, :P]                # polarity logits      (B, P)
    output_op = packed[:, P:P + L]        # opinion predictions  (B, L)
    return output, output_op


# ============================================================================
if __name__ == "__main__":
    B, L, D, P, V = 2, 8, 32, 3, 30       # batch, bert seq, bert_dim, polarities, vocab
    N = L + 1                             # 2 sentiment nodes + (L-1) word nodes

    key = jax.random.PRNGKey(0)
    keys = jax.random.split(key, 16)

    # ---- deterministic parameters (shapes from the module's __init__) ------
    word_emb   = jax.random.normal(keys[0],  (V, D), jnp.float32) * 0.1
    seg_emb    = jax.random.normal(keys[1],  (2, D), jnp.float32) * 0.1
    w_pool     = jax.random.normal(keys[2],  (D, D), jnp.float32) * 0.1
    b_pool     = jax.random.normal(keys[3],  (D,),   jnp.float32) * 0.1
    ln_gamma   = jnp.ones((D,), jnp.float32)
    ln_beta    = jnp.zeros((D,), jnp.float32)
    sent_embed = jax.random.normal(keys[4],  (2, D), jnp.float32) * 0.1
    w_gc1      = jax.random.normal(keys[5],  (D, D), jnp.float32) * 0.1
    b_gc1      = jax.random.normal(keys[6],  (1, D), jnp.float32) * 0.1
    w_gc2      = jax.random.normal(keys[7],  (D, D), jnp.float32) * 0.1
    b_gc2      = jax.random.normal(keys[8],  (1, D), jnp.float32) * 0.1
    w_op       = jax.random.normal(keys[9],  (D, 1), jnp.float32) * 0.1
    b_op       = jax.random.normal(keys[10], (1,),   jnp.float32) * 0.1
    w_fc       = jax.random.normal(keys[11], (2 * D, P), jnp.float32) * 0.1
    b_fc       = jax.random.normal(keys[12], (P,),   jnp.float32) * 0.1

    # ---- deterministic example inputs ---------------------------------------
    text_aspect_bert_indices = jax.random.randint(keys[13], (B, L), 1, V)
    text_aspect_bert_segments_ids = jnp.concatenate(
        [jnp.zeros((B, L // 2), jnp.int32), jnp.ones((B, L - L // 2), jnp.int32)],
        axis=1)
    aspect_indices = jnp.array([[4, 7, 0, 0], [9, 0, 0, 0]], jnp.int32)
    left_indices   = jnp.array([[3, 0, 0, 0], [2, 5, 0, 0]], jnp.int32)
    adj = (jax.random.uniform(keys[15], (B, N, N)) > 0.5).astype(jnp.float32)

    # ---- BERT stub (glue) ----------------------------------------------------
    # TODO(synk): the full BERT encoder (self.bert) has no in-script Pallas
    # equivalent; it is replaced by a deterministic embedding + tanh pooler.
    hidden = word_emb[text_aspect_bert_indices] + seg_emb[text_aspect_bert_segments_ids]
    cls = jnp.tanh(hidden[:, 0, :] @ w_pool + b_pool)     # pooler; dropout = identity

    aspect_len = jnp.sum(aspect_indices != 0, axis=-1)    # (B,)
    left_len   = jnp.sum(left_indices != 0, axis=-1)      # (B,)

    # ---- fused Pallas forward ------------------------------------------------
    output, output_op = segcn_bert_heads(
        hidden, cls, ln_gamma, ln_beta, w_op, b_op, sent_embed,
        adj, w_gc1, b_gc1, w_gc2, b_gc2, left_len, aspect_len, w_fc, b_fc)
    output = jax.block_until_ready(output)
    output_op = jax.block_until_ready(output_op)

    # ---- pure-JAX reference for sanity ---------------------------------------
    mean = jnp.mean(hidden, axis=-1, keepdims=True)
    var = jnp.mean((hidden - mean) ** 2, axis=-1, keepdims=True)
    ln_r = (hidden - mean) / jnp.sqrt(var + LN_EPS) * ln_gamma + ln_beta
    text_out_r = jnp.maximum(ln_r, 0.0)
    op_r = jax.nn.sigmoid(hidden @ w_op + b_op)[..., 0]
    sent_node = jnp.broadcast_to(sent_embed[None], (B, 2, D))
    xr = jnp.concatenate([sent_node, text_out_r[:, 1:]], axis=1)

    def gcn_ref(x, w, b):
        h = x @ w
        denom = jnp.sum(adj, axis=2, keepdims=True) + 1.0
        return jnp.einsum('bnm,bmd->bnd', adj, h) / denom + b

    x1 = jnp.maximum(gcn_ref(xr, w_gc1, b_gc1), 0.0)
    x2 = jnp.maximum(gcn_ref(x1, w_gc2, b_gc2), 0.0)
    j = jnp.arange(L - 1)
    word_mask = ((j[None, :] >= left_len[:, None]) &
                 (j[None, :] <= (left_len + aspect_len - 1)[:, None])
                 ).astype(jnp.float32)
    xw = x2[:, 2:] * word_mask[..., None]
    ra_r = jnp.sum(xw, axis=1) / aspect_len[:, None].astype(jnp.float32)
    out_r = jnp.concatenate([cls, ra_r], axis=-1) @ w_fc + b_fc

    np.testing.assert_allclose(np.asarray(output), np.asarray(out_r),
                               rtol=1e-2, atol=1e-2)
    np.testing.assert_allclose(np.asarray(output_op), np.asarray(op_r),
                               rtol=1e-2, atol=1e-2)

    print("KERNEL_OK")
</pallas_src>

<mosaic_0001>
module attributes {stable_mosaic.version = 11 : i64} {
  func.func @_segcn_fused_kernel(%arg0: memref<2x8x32xf32, #tpu.memory_space<vmem>>, %arg1: memref<2x32xf32, #tpu.memory_space<vmem>>, %arg2: memref<1x32xf32, #tpu.memory_space<vmem>>, %arg3: memref<1x32xf32, #tpu.memory_space<vmem>>, %arg4: memref<1x32xf32, #tpu.memory_space<vmem>>, %arg5: memref<1x1xf32, #tpu.memory_space<vmem>>, %arg6: memref<2x32xf32, #tpu.memory_space<vmem>>, %arg7: memref<2x9x9xf32, #tpu.memory_space<vmem>>, %arg8: memref<32x32xf32, #tpu.memory_space<vmem>>, %arg9: memref<1x32xf32, #tpu.memory_space<vmem>>, %arg10: memref<32x32xf32, #tpu.memory_space<vmem>>, %arg11: memref<1x32xf32, #tpu.memory_space<vmem>>, %arg12: memref<2x1xf32, #tpu.memory_space<vmem>>, %arg13: memref<2x1xf32, #tpu.memory_space<vmem>>, %arg14: memref<64x3xf32, #tpu.memory_space<vmem>>, %arg15: memref<1x3xf32, #tpu.memory_space<vmem>>, %arg16: memref<2x128xf32, #tpu.memory_space<vmem>>, %arg17: memref<9x32xf32, #tpu.memory_space<vmem>>, %arg18: memref<2x32xf32, #tpu.memory_space<vmem>>) attributes {dimension_semantics = [], scalar_prefetch = 0 : i64, scratch_operands = 2 : i64, tpu.core_type = #tpu.core_type<tc>} {
    %c0 = arith.constant 0 : index
    %c0_0 = arith.constant 0 : index
    %c0_1 = arith.constant 0 : index
    %0 = vector.load %arg0[%c0, %c0_0, %c0_1] : memref<2x8x32xf32, #tpu.memory_space<vmem>>, vector<2x8x32xf32>
    %cst = arith.constant dense<0.000000e+00> : vector<2x8xf32>
    %1 = vector.multi_reduction <add>, %0, %cst [2] : vector<2x8x32xf32> to vector<2x8xf32>
    %2 = vector.shape_cast %1 : vector<2x8xf32> to vector<2x8x1xf32>
    %cst_2 = arith.constant 3.200000e+01 : f32
    %3 = vector.broadcast %cst_2 : f32 to vector<2x8x1xf32>
    %4 = arith.divf %2, %3 : vector<2x8x1xf32>
    %5 = vector.broadcast %4 : vector<2x8x1xf32> to vector<2x8x32xf32>
    %6 = arith.subf %0, %5 : vector<2x8x32xf32>
    %7 = arith.mulf %6, %6 : vector<2x8x32xf32>
    %cst_3 = arith.constant dense<0.000000e+00> : vector<2x8xf32>
    %8 = vector.multi_reduction <add>, %7, %cst_3 [2] : vector<2x8x32xf32> to vector<2x8xf32>
    %9 = vector.shape_cast %8 : vector<2x8xf32> to vector<2x8x1xf32>
    %cst_4 = arith.constant 3.200000e+01 : f32
    %10 = vector.broadcast %cst_4 : f32 to vector<2x8x1xf32>
    %11 = arith.divf %9, %10 : vector<2x8x1xf32>
    %cst_5 = arith.constant 9.99999974E-6 : f32
    %12 = vector.broadcast %cst_5 : f32 to vector<2x8x1xf32>
    %13 = arith.addf %11, %12 : vector<2x8x1xf32>
    %14 = math.rsqrt %13 : vector<2x8x1xf32>
    %15 = vector.broadcast %14 : vector<2x8x1xf32> to vector<2x8x32xf32>
    %16 = arith.mulf %6, %15 : vector<2x8x32xf32>
    %c0_6 = arith.constant 0 : index
    %c0_7 = arith.constant 0 : index
    %17 = vector.load %arg2[%c0_6, %c0_7] : memref<1x32xf32, #tpu.memory_space<vmem>>, vector<1x32xf32>
    %18 = vector.shape_cast %17 : vector<1x32xf32> to vector<1x1x32xf32>
    %19 = vector.broadcast %18 : vector<1x1x32xf32> to vector<2x8x32xf32>
    %20 = arith.mulf %16, %19 : vector<2x8x32xf32>
    %c0_8 = arith.constant 0 : index
    %c0_9 = arith.constant 0 : index
    %21 = vector.load %arg3[%c0_8, %c0_9] : memref<1x32xf32, #tpu.memory_space<vmem>>, vector<1x32xf32>
    %22 = vector.shape_cast %21 : vector<1x32xf32> to vector<1x1x32xf32>
    %23 = vector.broadcast %22 : vector<1x1x32xf32> to vector<2x8x32xf32>
    %24 = arith.addf %20, %23 : vector<2x8x32xf32>
    %cst_10 = arith.constant 0.000000e+00 : f32
    %25 = vector.broadcast %cst_10 : f32 to vector<2x8x32xf32>
    %26 = arith.maximumf %24, %25 : vector<2x8x32xf32>
    %c0_11 = arith.constant 0 : index
    %c0_12 = arith.constant 0 : index
    %27 = vector.load %arg4[%c0_11, %c0_12] : memref<1x32xf32, #tpu.memory_space<vmem>>, vector<1x32xf32>
    %28 = vector.shape_cast %27 : vector<1x32xf32> to vector<1x1x32xf32>
    %29 = vector.broadcast %28 : vector<1x1x32xf32> to vector<2x8x32xf32>
    %30 = arith.mulf %0, %29 : vector<2x8x32xf32>
    %cst_13 = arith.constant dense<0.000000e+00> : vector<2x8xf32>
    %31 = vector.multi_reduction <add>, %30, %cst_13 [2] : vector<2x8x32xf32> to vector<2x8xf32>
    %c0_14 = arith.constant 0 : index
    %c0_15 = arith.constant 0 : index
    %32 = vector.load %arg5[%c0_14, %c0_15] : memref<1x1xf32, #tpu.memory_space<vmem>>, vector<1x1xf32>
    %33 = vector.broadcast %32 : vector<1x1xf32> to vector<2x8xf32>
    %34 = arith.addf %31, %33 : vector<2x8xf32>
    %35 = arith.negf %34 : vector<2x8xf32>
    %36 = math.exp %35 : vector<2x8xf32>
    %cst_16 = arith.constant 1.000000e+00 : f32
    %37 = vector.broadcast %cst_16 : f32 to vector<2x8xf32>
    %38 = arith.addf %37, %36 : vector<2x8xf32>
    %39 = arith.divf %37, %38 : vector<2x8xf32>
    %40 = tpu.iota {dimensions = array<i32: 1>} : vector<2x9xi32>
    %c2_i32 = arith.constant 2 : i32
    %41 = vector.broadcast %c2_i32 : i32 to vector<2x9xi32>
    %42 = arith.subi %40, %41 : vector<2x9xi32>
    %43 = arith.sitofp %42 : vector<2x9xi32> to vector<2x9xf32>
    %c0_17 = arith.constant 0 : index
    %c0_18 = arith.constant 0 : index
    %44 = vector.load %arg12[%c0_17, %c0_18] : memref<2x1xf32, #tpu.memory_space<vmem>>, vector<2x1xf32>
    %c0_19 = arith.constant 0 : index
    %c0_20 = arith.constant 0 : index
    %45 = vector.load %arg13[%c0_19, %c0_20] : memref<2x1xf32, #tpu.memory_space<vmem>>, vector<2x1xf32>
    %46 = vector.broadcast %44 : vector<2x1xf32> to vector<2x9xf32>
    %47 = arith.cmpf oge, %43, %46 : vector<2x9xf32>
    %48 = arith.addf %44, %45 : vector<2x1xf32>
    %cst_21 = arith.constant 1.000000e+00 : f32
    %49 = vector.broadcast %cst_21 : f32 to vector<2x1xf32>
    %50 = arith.subf %48, %49 : vector<2x1xf32>
    %51 = vector.broadcast %50 : vector<2x1xf32> to vector<2x9xf32>
    %52 = arith.cmpf ole, %43, %51 : vector<2x9xf32>
    %53 = arith.andi %47, %52 : vector<2x9xi1>
    %54 = arith.extui %53 : vector<2x9xi1> to vector<2x9xi32>
    %55 = arith.sitofp %54 : vector<2x9xi32> to vector<2x9xf32>
    %c0_22 = arith.constant 0 : index
    %c0_23 = arith.constant 0 : index
    %c0_24 = arith.constant 0 : index
    %56 = vector.load %arg7[%c0_22, %c0_23, %c0_24] : memref<2x9x9xf32, #tpu.memory_space<vmem>>, vector<2x9x9xf32>
    %cst_25 = arith.constant dense<0.000000e+00> : vector<2x9xf32>
    %57 = vector.multi_reduction <add>, %56, %cst_25 [2] : vector<2x9x9xf32> to vector<2x9xf32>
    %58 = vector.shape_cast %57 : vector<2x9xf32> to vector<2x9x1xf32>
    %cst_26 = arith.constant 1.000000e+00 : f32
    %59 = vector.broadcast %cst_26 : f32 to vector<2x9x1xf32>
    %60 = arith.addf %58, %59 : vector<2x9x1xf32>
    %61 = tpu.reciprocal %60 {approx = true} : vector<2x9x1xf32> -> vector<2x9x1xf32>
    %c0_27 = arith.constant 0 : index
    %c0_28 = arith.constant 0 : index
    %62 = vector.load %arg8[%c0_27, %c0_28] : memref<32x32xf32, #tpu.memory_space<vmem>>, vector<32x32xf32>
    %c0_29 = arith.constant 0 : index
    %c0_30 = arith.constant 0 : index
    %63 = vector.load %arg9[%c0_29, %c0_30] : memref<1x32xf32, #tpu.memory_space<vmem>>, vector<1x32xf32>
    %c0_31 = arith.constant 0 : index
    %c0_32 = arith.constant 0 : index
    %64 = vector.load %arg10[%c0_31, %c0_32] : memref<32x32xf32, #tpu.memory_space<vmem>>, vector<32x32xf32>
    %c0_33 = arith.constant 0 : index
    %c0_34 = arith.constant 0 : index
    %65 = vector.load %arg11[%c0_33, %c0_34] : memref<1x32xf32, #tpu.memory_space<vmem>>, vector<1x32xf32>
    %c0_35 = arith.constant 0 : index
    %c0_36 = arith.constant 0 : index
    %66 = vector.load %arg6[%c0_35, %c0_36] : memref<2x32xf32, #tpu.memory_space<vmem>>, vector<2x32xf32>
    %c0_37 = arith.constant 0 : index
    %c0_38 = arith.constant 0 : index
    %67 = vector.load %arg17[%c0_37, %c0_38] : memref<9x32xf32, #tpu.memory_space<vmem>>, vector<2x32xf32>
    tpu.vector_store %arg17[%c0_37, %c0_38], %66 {strides = array<i32>} : memref<9x32xf32, #tpu.memory_space<vmem>>, vector<2x32xf32>,
    %68 = vector.extract_strided_slice %26 {offsets = [0, 1, 0], sizes = [1, 7, 32], strides = [1, 1, 1]} : vector<2x8x32xf32> to vector<1x7x32xf32>
    %69 = vector.shape_cast %68 : vector<1x7x32xf32> to vector<7x32xf32>
    %c2 = arith.constant 2 : index
    %c0_39 = arith.constant 0 : index
    %70 = vector.load %arg17[%c2, %c0_39] : memref<9x32xf32, #tpu.memory_space<vmem>>, vector<7x32xf32>
    tpu.vector_store %arg17[%c2, %c0_39], %69 {strides = array<i32>} : memref<9x32xf32, #tpu.memory_space<vmem>>, vector<7x32xf32>,
    %c0_40 = arith.constant 0 : index
    %c0_41 = arith.constant 0 : index
    %71 = vector.load %arg17[%c0_40, %c0_41] : memref<9x32xf32, #tpu.memory_space<vmem>>, vector<9x32xf32>
    %72 = vector.extract_strided_slice %56 {offsets = [0, 0, 0], sizes = [1, 9, 9], strides = [1, 1, 1]} : vector<2x9x9xf32> to vector<1x9x9xf32>
    %73 = vector.shape_cast %72 : vector<1x9x9xf32> to vector<9x9xf32>
    %74 = vector.extract_strided_slice %61 {offsets = [0, 0, 0], sizes = [1, 9, 1], strides = [1, 1, 1]} : vector<2x9x1xf32> to vector<1x9x1xf32>
    %75 = vector.shape_cast %74 : vector<1x9x1xf32> to vector<9x1xf32>
    %cst_42 = arith.constant dense<0.000000e+00> : vector<9x32xf32>
    %76 = tpu.matmul %71, %62, %cst_42 {dimension_numbers = #tpu.dot_dimension_numbers<[1], [0], [0], [1], [0, 0, 1, 1], [], []>} : vector<9x32xf32>, vector<32x32xf32>, vector<9x32xf32> -> vector<9x32xf32>
    %cst_43 = arith.constant dense<0.000000e+00> : vector<9x32xf32>
    %77 = tpu.matmul %73, %76, %cst_43 {dimension_numbers = #tpu.dot_dimension_numbers<[1], [0], [0], [1], [0, 0, 1, 1], [], []>} : vector<9x9xf32>, vector<9x32xf32>, vector<9x32xf32> -> vector<9x32xf32>
    %78 = vector.broadcast %75 : vector<9x1xf32> to vector<9x32xf32>
    %79 = arith.mulf %77, %78 : vector<9x32xf32>
    %80 = vector.broadcast %63 : vector<1x32xf32> to vector<9x32xf32>
    %81 = arith.addf %79, %80 : vector<9x32xf32>
    %cst_44 = arith.constant 0.000000e+00 : f32
    %82 = vector.broadcast %cst_44 : f32 to vector<9x32xf32>
    %83 = arith.maximumf %81, %82 : vector<9x32xf32>
    %cst_45 = arith.constant dense<0.000000e+00> : vector<9x32xf32>
    %84 = tpu.matmul %83, %64, %cst_45 {dimension_numbers = #tpu.dot_dimension_numbers<[1], [0], [0], [1], [0, 0, 1, 1], [], []>} : vector<9x32xf32>, vector<32x32xf32>, vector<9x32xf32> -> vector<9x32xf32>
    %cst_46 = arith.constant dense<0.000000e+00> : vector<9x32xf32>
    %85 = tpu.matmul %73, %84, %cst_46 {dimension_numbers = #tpu.dot_dimension_numbers<[1], [0], [0], [1], [0, 0, 1, 1], [], []>} : vector<9x9xf32>, vector<9x32xf32>, vector<9x32xf32> -> vector<9x32xf32>
    %86 = vector.broadcast %75 : vector<9x1xf32> to vector<9x32xf32>
    %87 = arith.mulf %85, %86 : vector<9x32xf32>
    %88 = vector.broadcast %65 : vector<1x32xf32> to vector<9x32xf32>
    %89 = arith.addf %87, %88 : vector<9x32xf32>
    %cst_47 = arith.constant 0.000000e+00 : f32
    %90 = vector.broadcast %cst_47 : f32 to vector<9x32xf32>
    %91 = arith.maximumf %89, %90 : vector<9x32xf32>
    %92 = vector.extract_strided_slice %55 {offsets = [0, 0], sizes = [1, 9], strides = [1, 1]} : vector<2x9xf32> to vector<1x9xf32>
    %cst_48 = arith.constant dense<0.000000e+00> : vector<1x32xf32>
    %93 = tpu.matmul %92, %91, %cst_48 {dimension_numbers = #tpu.dot_dimension_numbers<[1], [0], [0], [1], [0, 0, 1, 1], [], []>} : vector<1x9xf32>, vector<9x32xf32>, vector<1x32xf32> -> vector<1x32xf32>
    %c0_49 = arith.constant 0 : index
    %c0_50 = arith.constant 0 : index
    %94 = vector.load %arg18[%c0_49, %c0_50] : memref<2x32xf32, #tpu.memory_space<vmem>>, vector<1x32xf32>
    tpu.vector_store %arg18[%c0_49, %c0_50], %93 {strides = array<i32>} : memref<2x32xf32, #tpu.memory_space<vmem>>, vector<1x32xf32>,
    %95 = vector.extract_strided_slice %26 {offsets = [1, 1, 0], sizes = [1, 7, 32], strides = [1, 1, 1]} : vector<2x8x32xf32> to vector<1x7x32xf32>
    %96 = vector.shape_cast %95 : vector<1x7x32xf32> to vector<7x32xf32>
    %c2_51 = arith.constant 2 : index
    %c0_52 = arith.constant 0 : index
    %97 = vector.load %arg17[%c2_51, %c0_52] : memref<9x32xf32, #tpu.memory_space<vmem>>, vector<7x32xf32>
    tpu.vector_store %arg17[%c2_51, %c0_52], %96 {strides = array<i32>} : memref<9x32xf32, #tpu.memory_space<vmem>>, vector<7x32xf32>,
    %c0_53 = arith.constant 0 : index
    %c0_54 = arith.constant 0 : index
    %98 = vector.load %arg17[%c0_53, %c0_54] : memref<9x32xf32, #tpu.memory_space<vmem>>, vector<9x32xf32>
    %99 = vector.extract_strided_slice %56 {offsets = [1, 0, 0], sizes = [1, 9, 9], strides = [1, 1, 1]} : vector<2x9x9xf32> to vector<1x9x9xf32>
    %100 = vector.shape_cast %99 : vector<1x9x9xf32> to vector<9x9xf32>
    %101 = vector.extract_strided_slice %61 {offsets = [1, 0, 0], sizes = [1, 9, 1], strides = [1, 1, 1]} : vector<2x9x1xf32> to vector<1x9x1xf32>
    %102 = vector.shape_cast %101 : vector<1x9x1xf32> to vector<9x1xf32>
    %cst_55 = arith.constant dense<0.000000e+00> : vector<9x32xf32>
    %103 = tpu.matmul %98, %62, %cst_55 {dimension_numbers = #tpu.dot_dimension_numbers<[1], [0], [0], [1], [0, 0, 1, 1], [], []>} : vector<9x32xf32>, vector<32x32xf32>, vector<9x32xf32> -> vector<9x32xf32>
    %cst_56 = arith.constant dense<0.000000e+00> : vector<9x32xf32>
    %104 = tpu.matmul %100, %103, %cst_56 {dimension_numbers = #tpu.dot_dimension_numbers<[1], [0], [0], [1], [0, 0, 1, 1], [], []>} : vector<9x9xf32>, vector<9x32xf32>, vector<9x32xf32> -> vector<9x32xf32>
    %105 = vector.broadcast %102 : vector<9x1xf32> to vector<9x32xf32>
    %106 = arith.mulf %104, %105 : vector<9x32xf32>
    %107 = vector.broadcast %63 : vector<1x32xf32> to vector<9x32xf32>
    %108 = arith.addf %106, %107 : vector<9x32xf32>
    %cst_57 = arith.constant 0.000000e+00 : f32
    %109 = vector.broadcast %cst_57 : f32 to vector<9x32xf32>
    %110 = arith.maximumf %108, %109 : vector<9x32xf32>
    %cst_58 = arith.constant dense<0.000000e+00> : vector<9x32xf32>
    %111 = tpu.matmul %110, %64, %cst_58 {dimension_numbers = #tpu.dot_dimension_numbers<[1], [0], [0], [1], [0, 0, 1, 1], [], []>} : vector<9x32xf32>, vector<32x32xf32>, vector<9x32xf32> -> vector<9x32xf32>
    %cst_59 = arith.constant dense<0.000000e+00> : vector<9x32xf32>
    %112 = tpu.matmul %100, %111, %cst_59 {dimension_numbers = #tpu.dot_dimension_numbers<[1], [0], [0], [1], [0, 0, 1, 1], [], []>} : vector<9x9xf32>, vector<9x32xf32>, vector<9x32xf32> -> vector<9x32xf32>
    %113 = vector.broadcast %102 : vector<9x1xf32> to vector<9x32xf32>
    %114 = arith.mulf %112, %113 : vector<9x32xf32>
    %115 = vector.broadcast %65 : vector<1x32xf32> to vector<9x32xf32>
    %116 = arith.addf %114, %115 : vector<9x32xf32>
    %cst_60 = arith.constant 0.000000e+00 : f32
    %117 = vector.broadcast %cst_60 : f32 to vector<9x32xf32>
    %118 = arith.maximumf %116, %117 : vector<9x32xf32>
    %119 = vector.extract_strided_slice %55 {offsets = [1, 0], sizes = [1, 9], strides = [1, 1]} : vector<2x9xf32> to vector<1x9xf32>
    %cst_61 = arith.constant dense<0.000000e+00> : vector<1x32xf32>
    %120 = tpu.matmul %119, %118, %cst_61 {dimension_numbers = #tpu.dot_dimension_numbers<[1], [0], [0], [1], [0, 0, 1, 1], [], []>} : vector<1x9xf32>, vector<9x32xf32>, vector<1x32xf32> -> vector<1x32xf32>
    %c1 = arith.constant 1 : index
    %c0_62 = arith.constant 0 : index
    %121 = vector.load %arg18[%c1, %c0_62] : memref<2x32xf32, #tpu.memory_space<vmem>>, vector<1x32xf32>
    tpu.vector_store %arg18[%c1, %c0_62], %120 {strides = array<i32>} : memref<2x32xf32, #tpu.memory_space<vmem>>, vector<1x32xf32>,
    %c0_63 = arith.constant 0 : index
    %c0_64 = arith.constant 0 : index
    %122 = vector.load %arg18[%c0_63, %c0_64] : memref<2x32xf32, #tpu.memory_space<vmem>>, vector<2x32xf32>
    %123 = tpu.reciprocal %45 {approx = true} : vector<2x1xf32> -> vector<2x1xf32>
    %124 = vector.broadcast %123 : vector<2x1xf32> to vector<2x32xf32>
    %125 = arith.mulf %122, %124 : vector<2x32xf32>
    %c0_65 = arith.constant 0 : index
    %c0_66 = arith.constant 0 : index
    %126 = vector.load %arg1[%c0_65, %c0_66] : memref<2x32xf32, #tpu.memory_space<vmem>>, vector<2x32xf32>
    %c0_67 = arith.constant 0 : index
    %c0_68 = arith.constant 0 : index
    %127 = vector.load %arg14[%c0_67, %c0_68] : memref<64x3xf32, #tpu.memory_space<vmem>>, vector<32x3xf32>
    %cst_69 = arith.constant dense<0.000000e+00> : vector<2x3xf32>
    %128 = tpu.matmul %126, %127, %cst_69 {dimension_numbers = #tpu.dot_dimension_numbers<[1], [0], [0], [1], [0, 0, 1, 1], [], []>} : vector<2x32xf32>, vector<32x3xf32>, vector<2x3xf32> -> vector<2x3xf32>
    %c32 = arith.constant 32 : index
    %c0_70 = arith.constant 0 : index
    %129 = vector.load %arg14[%c32, %c0_70] : memref<64x3xf32, #tpu.memory_space<vmem>>, vector<32x3xf32>
    %cst_71 = arith.constant dense<0.000000e+00> : vector<2x3xf32>
    %130 = tpu.matmul %125, %129, %cst_71 {dimension_numbers = #tpu.dot_dimension_numbers<[1], [0], [0], [1], [0, 0, 1, 1], [], []>} : vector<2x32xf32>, vector<32x3xf32>, vector<2x3xf32> -> vector<2x3xf32>
    %131 = arith.addf %128, %130 : vector<2x3xf32>
    %c0_72 = arith.constant 0 : index
    %c0_73 = arith.constant 0 : index
    %132 = vector.load %arg15[%c0_72, %c0_73] : memref<1x3xf32, #tpu.memory_space<vmem>>, vector<1x3xf32>
    %133 = vector.broadcast %132 : vector<1x3xf32> to vector<2x3xf32>
    %134 = arith.addf %131, %133 : vector<2x3xf32>
    %cst_74 = arith.constant 0.000000e+00 : f32
    %135 = vector.broadcast %cst_74 : f32 to vector<2x117xf32>
    %136 = tpu.concatenate %134, %39, %135 in 1 : vector<2x3xf32>, vector<2x8xf32>, vector<2x117xf32> -> vector<2x128xf32>
    %c0_75 = arith.constant 0 : index
    %c0_76 = arith.constant 0 : index
    %137 = vector.load %arg16[%c0_75, %c0_76] : memref<2x128xf32, #tpu.memory_space<vmem>>, vector<2x128xf32>
    tpu.vector_store %arg16[%c0_75, %c0_76], %136 {strides = array<i32>} : memref<2x128xf32, #tpu.memory_space<vmem>>, vector<2x128xf32>,
    return
  }
}

</mosaic_0001>

<bundles_post_ra>
// kernel: tpu_custom_call.1
= control target key start
LH: loop header
LB: loop body
LE: loop exit
PB: predicated region body
PF: predicated region fallthrough
CT: control target
= control target key end

     0   :  { %s1061_s0 = inlined_call_operand.vmem [shape: f32[2,8,32], index: 0, kind: input, shape index: {}]   ;;  %s1062_s1 = inlined_call_operand.vmem [shape: f32[2,32], index: 1, kind: input, shape index: {}]   ;;  %s1063_s2 = inlined_call_operand.vmem [shape: f32[1,32], index: 2, kind: input, shape index: {}]   ;;  %s1064_s3 = inlined_call_operand.vmem [shape: f32[1,32], index: 3, kind: input, shape index: {}]   ;;  %s1065_s4 = inlined_call_operand.vmem [shape: f32[1,32], index: 4, kind: input, shape index: {}]   ;;  %s1066_s5 = inlined_call_operand.<no memory space> [shape: f32[1,1], index: 5, kind: input, shape index: {}]   ;;  %s1067_s6 = inlined_call_operand.vmem [shape: f32[2,32], index: 6, kind: input, shape index: {}]   ;;  %s1068_s7 = inlined_call_operand.vmem [shape: f32[2,9,9], index: 7, kind: input, shape index: {}]   ;;  %s1069_s8 = inlined_call_operand.vmem [shape: f32[32,32], index: 8, kind: input, shape index: {}]   ;;  %s1070_s9 = inlined_call_operand.vmem [shape: f32[1,32], index: 9, kind: input, shape index: {}]   ;;  %s1071_s10 = inlined_call_operand.vmem [shape: f32[32,32], index: 10, kind: input, shape index: {}]   ;;  %s1072_s11 = inlined_call_operand.vmem [shape: f32[1,32], index: 11, kind: input, shape index: {}]   ;;  %s1073_s12 = inlined_call_operand.vmem [shape: f32[2,1], index: 12, kind: input, shape index: {}]   ;;  %s1074_s13 = inlined_call_operand.vmem [shape: f32[2,1], index: 13, kind: input, shape index: {}]   ;;  %s1075_s14 = inlined_call_operand.vmem [shape: f32[64,3], index: 14, kind: input, shape index: {}]   ;;  %s1076_s15 = inlined_call_operand.vmem [shape: f32[1,3], index: 15, kind: input, shape index: {}]   ;;  %s1077_s16 = inlined_call_operand.hbm [shape: f32[2,128], index: 16, kind: output, shape index: {}]  }
   0x1   :  { %1079 = sst [smem:[#allocation8_spill]] %s1061_s0  ;;  %v21_v0 = vstv %s1066_s5 }
   0x2   :  { %22 = vst [vmem:[#allocation4] sm:$0x1] %v21_v0 }
   0x3   :  { %s1080_s25 = sld [smem:[#allocation8_spill]]  ;;  %vm58_vm0 = vcmask 261120  }
   0x9   :  { %v857_v1 = vld [vmem:[%s1080_s25] sm:$0xff] }
   0xa   :  { %v59_v2 = vsel %vm58_vm0, %v857_v1, 0.0 }
   0xb   :  { %60 = vadd.xlane.f32.xlu0 %v59_v2 }
   0xc   :  { %23 = vsyncpa [#allocation6], 0  ;;  %v762_v3 = vmov 32.0   ;;  %v242_v15 = vld [vmem:[%s1067_s6] sm:$0x3]  ;;  %vm243_vm2 = vcmask 254976  }
   0xd   :  { %712 = vrcp.f32 %v762_v3  ;;  %v872_v16 = vld [vmem:[%s1069_s8 + $0x18] sm:$0xff]  ;;  %v877_v17 = vld [vmem:[%s1069_s8 + $0x10] sm:$0xff]  ;;  %244 = vst.msk [vmem:[#allocation2] sm:$0x3] %vm243_vm2, %v242_v15  ;;  %v884_v20 = vld [vmem:[%s1069_s8 + $0x8] sm:$0xff]  ;;  %vm245_vm6 = vcmask 261121  }
   0xe   :  { %267 = vmatpush.msra.mxu0 %v872_v16  ;;  %v890_v22 = vld [vmem:[%s1069_s8] sm:$0xff]  ;;  %v897_v26 = vld [vmem:[%s1080_s25 + $0x8] sm:$0xff]  ;;  %vm210_vm7 = vcmask 72704   ;;  %vm214_vm8 = vcmask 65536   ;;  %vm284_vm9 = vcmask 1040384   ;;  %v240_v56 = vld [vmem:[%s1071_s10 + $0x18] sm:$0xff] }
   0xf   :  { %v62_v28 = vsel %vm58_vm0, %v897_v26, 0.0  ;;  %v705_v31 = vld [vmem:[%s1063_s2] ss:$0 sm:$0xff]  ;;  %v923_v47 = vld [vmem:[%s1068_s7 + $0x8] sm:$0x1]  ;;  %338 = vmatpush.msra.mxu2 %v240_v56  ;;  %v239_v58 = vld [vmem:[%s1071_s10 + $0x10] sm:$0xff] }
  0x10   :  { %268 = vmatpush.msra.mxu0 %v877_v17  ;;  %63 = vadd.xlane.f32.xlu2 %v62_v28  ;;  %v706_v33 = vld [vmem:[%s1064_s3] ss:$0 sm:$0xff]  ;;  %v215_v48 = vsel %vm214_vm8, %v923_v47, 0.0  ;;  %v238_v60 = vld [vmem:[%s1071_s10 + $0x8] sm:$0xff]  ;;  %s765_s20 = smov [#allocation5]   ;;  %s658_s23 = sshll.u32 %s1077_s16, 4  ;;  %s659_s23 = int_to_ptr.hbm [resolvable:$true] %s658_s23 }
  0x11   :  { %v916_v45 = vld [vmem:[%s1068_s7] sm:$0xff]  ;;  %339 = vmatpush.msra.mxu2 %v239_v58  ;;  %s656_s8 = sshll.u32 %s765_s20, 4  ;;  %s657_s8 = int_to_ptr.vmem [resolvable:$true] %s656_s8 }
  0x12   :  { %269 = vmatpush.msra.mxu0 %v884_v20  ;;  %v211_v46 = vsel %vm210_vm7, %v916_v45, 0.0  ;;  %v237_v62 = vld [vmem:[%s1071_s10] sm:$0xff] }
  0x13   :  { %v713_v4 = vpop.eup %712  ;;  %212 = vadd.xlane.f32.xlu1 %v211_v46  ;;  %340 = vmatpush.msra.mxu2 %v238_v60 }
  0x14   :  { %v66_v5 = vmul.f32 32.0, %v713_v4  ;;  %vm70_vm1 = vweird.f32 %v713_v4  ;;  %270 = vmatpush.msra.mxu0 %v890_v22 }
  0x15   :  { %341 = vmatpush.msra.mxu2 %v237_v62 }
  0x16   :  { %v67_v6 = vsub.f32 1.0, %v66_v5 }
  0x17   :  { %500 = vmatpush.msrb.mxu2 %v240_v56 }
  0x18   :  { %v68_v7 = vmul.f32 %v713_v4, %v67_v6 }
  0x19   :  { %501 = vmatpush.msrb.mxu2 %v239_v58 }
  0x1a   :  { %v69_v8 = vadd.f32 %v713_v4, %v68_v7 }
  0x1b   :  { %216 = vadd.xlane.f32.xlu1 %v215_v48  ;;  %502 = vmatpush.msrb.mxu2 %v238_v60  ;;  %v764_v60 = vmov 0.0  }
  0x1c   :  { %v861_v9 = vsel %vm70_vm1, %v713_v4, %v69_v8  ;;  %vm410_vm1 = vcmask 253952  }
  0x1d   :  { %503 = vmatpush.msrb.mxu2 %v237_v62 }
  0x7e   :  { %v61_v10 = vpop.xlane.xlu0 %60 }
  0x7f   :  { %v72_v11 = vmul.f32 %v861_v9, %v61_v10 }
  0x81   :  { %v74_v12 = vsub.f32 %v857_v1, %v72_v11  ;;  %v949_v11 = vld [vmem:[%s1070_s9] ss:$0 sm:$0xff] }
  0x83   :  { %v76_v13 = vmul.f32 %v74_v12, %v74_v12  ;;  %v64_v40 = vpop.xlane.xlu2 %63 }
  0x84   :  { %v73_v41 = vmul.f32 %v861_v9, %v64_v40 }
  0x85   :  { %v78_v14 = vsel %vm58_vm0, %v76_v13, 0.0 }
  0x86   :  { %79 = vadd.xlane.f32.xlu0 %v78_v14  ;;  %v75_v42 = vsub.f32 %v897_v26, %v73_v41  ;;  %v213_v6 = vpop.xlane.xlu1 %212 }
  0x87   :  { %v224_v7 = vadd.f32 1.0, %v213_v6 }
  0x88   :  { %v77_v43 = vmul.f32 %v75_v42, %v75_v42 }
  0x8a   :  { %v81_v44 = vsel %vm58_vm0, %v77_v43, 0.0 }
  0x8b   :  { %82 = vadd.xlane.f32.xlu2 %v81_v44 }
  0x8e   :  { %v217_v8 = vpop.xlane.xlu1 %216 }
  0xf9   :  { %v80_v18 = vpop.xlane.xlu0 %79 }
  0xfa   :  { %v84_v19 = vmul.f32 %v80_v18, %v861_v9 }
  0xfc   :  { %v86_v21 = vadd.f32 1e-05, %v84_v19 }
  0xfe   :  { %714 = vrsqrt.f32 %v86_v21  ;;  %vm94_vm4 = vweird.f32 %v86_v21  ;;  %v83_v51 = vpop.xlane.xlu2 %82 }
  0xff   :  { %v85_v52 = vmul.f32 %v83_v51, %v861_v9  ;;  %v225_v9 = vadd.f32 1.0, %v217_v8 }
 0x101   :  { %v87_v53 = vadd.f32 1e-05, %v85_v52  ;;  %v710_v52 = vld [vmem:[#allocation4] ss:$0 sm:$0xff] }
 0x103   :  { %716 = vrsqrt.f32 %v87_v53  ;;  %vm104_vm10 = vweird.f32 %v87_v53 }
 0x104   :  { %v715_v23 = vpop.eup %714  ;;  %718 = vrcp.f32 %v224_v7 }
 0x105   :  { %v89_v24 = vmul.f32 %v715_v23, %v86_v21  ;;  %vm95_vm3 = vweird.f32 %v715_v23  ;;  %720 = vrcp.f32 %v225_v9 }
 0x106   :  { %vm96_vm5 = vmor %vm94_vm4, %vm95_vm3 }
 0x107   :  { %v90_v25 = vmul.f32 %v715_v23, %v89_v24 }
 0x109   :  { %v91_v27 = vmul.f32 0.5, %v90_v25  ;;  %v717_v54 = vpop.eup %716 }
 0x10a   :  { %v99_v55 = vmul.f32 %v717_v54, %v87_v53  ;;  %vm105_vm11 = vweird.f32 %v717_v54  ;;  %v719_v10 = vpop.eup %718 }
 0x10b   :  { %v92_v29 = vsub.f32 1.5, %v91_v27  ;;  %vm106_vm12 = vmor %vm104_vm10, %vm105_vm11  ;;  %v721_v18 = vpop.eup %720  ;;  %vm646_vm10 = vcmask 23552   ;;  %vm648_vm11 = vcmask 89088  }
 0x10c   :  { %v100_v57 = vmul.f32 %v717_v54, %v99_v55 }
 0x10d   :  { %v93_v30 = vmul.f32 %v715_v23, %v92_v29 }
 0x10e   :  { %v101_v59 = vmul.f32 0.5, %v100_v57 }
 0x10f   :  { %v97_v32 = vsel %vm96_vm5, %v715_v23, %v93_v30  ;;  %v969_v30 = vld [vmem:[%s1068_s7 + $0x10] sm:$0xff] }
 0x110   :  { %v108_v34 = vmul.f32 %v97_v32, %v74_v12  ;;  %v102_v61 = vsub.f32 1.5, %v101_v59  ;;  %v763_v32 = vmov 0  }
 0x111   :  { %702 = vset.pattern.permute.xlu2 %v763_v32  ;;  %704 = vset.pattern.permute.xlu1 %v763_v32 }
 0x112   :  { %v114_v35 = vmul.f32 %v705_v31, %v108_v34  ;;  %v103_v63 = vmul.f32 %v717_v54, %v102_v61  ;;  %v986_v34 = vld [vmem:[%s1072_s11] ss:$0 sm:$0xff]  ;;  %703 = vset.pattern.permute.xlu0 %v763_v32 }
 0x114   :  { %v120_v36 = vadd.f32 %v706_v33, %v114_v35  ;;  %v107_v0 = vsel %vm106_vm12, %v717_v54, %v103_v63  ;;  %v183_v54 = vlaneseq }
 0x115   :  { %v109_v2 = vmul.f32 %v107_v0, %v75_v42 }
 0x116   :  { %v122_v37 = vmax.f32 %v120_v36, 0.0  ;;  %v188_v36 = vld [vmem:[%s1074_s13] sm:$0x3]  ;;  %v1006_v55 = vand.u32 127, %v183_v54 }
 0x117   :  { %v115_v3 = vmul.f32 %v705_v31, %v109_v2  ;;  %v187_v31 = vld [vmem:[%s1073_s12] sm:$0x3]  ;;  %722 = vrcp.f32 %v188_v36 }
 0x118   :  { %246 = vst.msk [vmem:[#allocation2 + $0x1] sm:$0xfe] %vm245_vm6, %v122_v37  ;;  %191 = vperm.xlu2 %702, %v187_v31   ;;  %v669_v56 = vadd.s32 4294967294, %v1006_v55 }
 0x119   :  { %v121_v4 = vadd.f32 %v706_v33, %v115_v3 }
 0x11a   :  { %v186_v58 = vcvt.s32.f32 %v669_v56 }
 0x11b   :  { %v123_v5 = vmax.f32 %v121_v4, 0.0 }
 0x11d   :  { %v723_v46 = vpop.eup %722 }
 0x11f   :  { %v247_v38 = vld [vmem:[#allocation2] sm:$0xff]  ;;  %v248_v39 = vld [vmem:[#allocation2 + $0x8] sm:$0x1] }
 0x120   :  { %672 = vmatmul.msk.f32.vlgmr.msra.gmra.mxu0 %vm58_vm0, %v247_v38  ;;  %412 = vst.msk [vmem:[#allocation2 + $0x1] sm:$0xfe] %vm245_vm6, %v123_v5  ;;  %v195_v38 = vadd.f32 %v188_v36, %v187_v31  ;;  %v583_v31 = vld [vmem:[%s1075_s14 + $0x20] sm:$0xff] }
 0x122   :  { %v670_v42 = vadd.f32 -1.0, %v195_v38 }
 0x127   :  { %v413_v28 = vld [vmem:[#allocation2] sm:$0xff]  ;;  %v414_v29 = vld [vmem:[#allocation2 + $0x8] sm:$0x1] }
 0x128   :  { %673 = vmatmul.msk.f32.gmra.mxu0 %vm58_vm0, %v248_v39 }
 0x172   :  { %v192_v59 = vpop.permute.xlu2 %191 }
 0x173   :  { %vm194_vm13 = vcmp.ge.f32.partialorder %v186_v58, %v192_v59 }
 0x19d   :  { %v272_v49 = vpop.f32.mrf.mxu0 }
 0x1a5   :  { %v275_v50 = vpop.f32.mrf.mxu0 }
 0x1a6   :  { %674 = vmatpush.msk.msra.mxu1 %vm284_vm9, %v275_v50 }
 0x1a8   :  { %303 = vmatpush.msra.mxu1 %v272_v49 }
 0x1a9   :  { %675 = vmatmul.msk.f32.vlgmr.msra.gmra.mxu1 %vm210_vm7, %v916_v45 }
 0x1b1   :  { %676 = vmatmul.msk.f32.gmra.mxu1 %vm210_vm7, %v923_v47 }
 0x226   :  { %v305_v12 = vpop.f32.mrf.mxu1 }
 0x227   :  { %v311_v13 = vmul.f32 %v719_v10, %v305_v12 }
 0x229   :  { %v316_v14 = vadd.f32 %v949_v11, %v311_v13 }
 0x22b   :  { %v318_v15 = vmax.f32 %v316_v14, 0.0 }
 0x22d   :  { %677 = vmatmul.msk.f32.vlgmr.msra.gmra.mxu2 %vm58_vm0, %v318_v15 }
 0x22e   :  { %v308_v19 = vpop.f32.mrf.mxu1 }
 0x22f   :  { %v312_v21 = vmul.f32 %v721_v18, %v308_v19 }
 0x231   :  { %v317_v23 = vadd.f32 %v949_v11, %v312_v21 }
 0x233   :  { %v319_v24 = vmax.f32 %v317_v23, 0.0 }
 0x235   :  { %678 = vmatmul.msk.f32.gmra.mxu2 %vm58_vm0, %v319_v24 }
 0x2b0   :  { %v343_v25 = vpop.f32.mrf.mxu2 }
 0x2b8   :  { %v346_v27 = vpop.f32.mrf.mxu2 }
 0x2b9   :  { %679 = vmatpush.msk.msra.mxu3 %vm284_vm9, %v346_v27 }
 0x2bb   :  { %367 = vmatpush.msra.mxu3 %v343_v25 }
 0x2bc   :  { %680 = vmatmul.msk.f32.vlgmr.msra.gmra.mxu3 %vm210_vm7, %v916_v45 }
 0x2bd   :  { %433 = vmatpush.msrb.mxu3 %v872_v16  ;;  %v218_v16 = vsel %vm210_vm7, %v969_v30, 0.0 }
 0x2be   :  { %219 = vadd.xlane.f32.xlu0 %v218_v16  ;;  %v579_v16 = vld [vmem:[%s1075_s14] sm:$0xff] }
 0x2bf   :  { %434 = vmatpush.msrb.mxu3 %v877_v17 }
 0x2c1   :  { %435 = vmatpush.msrb.mxu3 %v884_v20  ;;  %v976_v20 = vld [vmem:[%s1068_s7 + $0x18] sm:$0x1] }
 0x2c3   :  { %436 = vmatpush.msrb.mxu3 %v890_v22  ;;  %v221_v22 = vsel %vm214_vm8, %v976_v20, 0.0 }
 0x2c4   :  { %681 = vmatmul.msk.f32.gmra.mxu3 %vm210_vm7, %v923_v47  ;;  %222 = vadd.xlane.f32.xlu1 %v221_v22  ;;  %v709_v47 = vld [vmem:[%s1065_s4] ss:$0 sm:$0xff]  ;;  %v584_v22 = vld [vmem:[%s1075_s14 + $0x28] sm:$0xff] }
 0x2c5   :  { %v129_v48 = vmul.f32 %v709_v47, %v897_v26  ;;  %v128_v49 = vmul.f32 %v709_v47, %v857_v1 }
 0x2c7   :  { %v133_v50 = vsel %vm58_vm0, %v129_v48, 0.0  ;;  %v130_v51 = vsel %vm58_vm0, %v128_v49, 0.0 }
 0x2c8   :  { %131 = vadd.xlane.f32.xlu2 %v130_v51 }
 0x2cc   :  { %684 = vmatmul.msk.f32.vlgmr.msrb.gmra.mxu3 %vm58_vm0, %v413_v28  ;;  %v581_v28 = vld [vmem:[%s1075_s14 + $0x10] sm:$0xff] }
 0x2d2   :  { %199 = vperm.xlu0 %703, %v670_v42  }
 0x2d4   :  { %685 = vmatmul.msk.f32.gmra.mxu3 %vm58_vm0, %v414_v29  ;;  %v580_v29 = vld [vmem:[%s1075_s14 + $0x8] sm:$0xff] }
 0x2da   :  { %140 = vperm.xlu0 %703, %v710_v52  }
 0x2dd   :  { %574 = vperm.xlu1 %704, %v723_v46  }
 0x307   :  { %134 = vadd.xlane.f32.xlu1 %v133_v50 }
 0x331   :  { %v220_v53 = vpop.xlane.xlu0 %219 }
 0x332   :  { %v226_v57 = vadd.f32 1.0, %v220_v53 }
 0x334   :  { %724 = vrcp.f32 %v226_v57 }
 0x337   :  { %v223_v1 = vpop.xlane.xlu1 %222 }
 0x338   :  { %v227_v62 = vadd.f32 1.0, %v223_v1 }
 0x33a   :  { %v725_v63 = vpop.eup %724  ;;  %726 = vrcp.f32 %v227_v62 }
 0x33b   :  { %v132_v36 = vpop.xlane.xlu2 %131 }
 0x33f   :  { %v369_v17 = vpop.f32.mrf.mxu3 }
 0x340   :  { %v375_v33 = vmul.f32 %v719_v10, %v369_v17  ;;  %v727_v5 = vpop.eup %726  ;;  %v578_v17 = vld [vmem:[%s1062_s1] sm:$0x3] }
 0x342   :  { %v380_v40 = vadd.f32 %v986_v34, %v375_v33 }
 0x344   :  { %v382_v43 = vmax.f32 %v380_v40, 0.0  ;;  %v200_v26 = vpop.permute.xlu0 %199 }
 0x345   :  { %vm202_vm14 = vcmp.le.f32.partialorder %v186_v58, %v200_v26 }
 0x346   :  { %vm203_vm15 = vmand %vm194_vm13, %vm202_vm14 }
 0x347   :  { %v372_v35 = vpop.f32.mrf.mxu3  ;;  %v671_v61 = vsel %vm203_vm15, 1.0, %v764_v60 }
 0x348   :  { %v376_v37 = vmul.f32 %v721_v18, %v372_v35  ;;  %v543_v27 = vrot.slane %v671_v61, 1 }
 0x34a   :  { %v381_v39 = vadd.f32 %v986_v34, %v376_v37 }
 0x34c   :  { %v383_v41 = vmax.f32 %v381_v39, 0.0  ;;  %v141_v37 = vpop.permute.xlu0 %140 }
 0x34d   :  { %v143_v39 = vadd.f32 %v141_v37, %v132_v36 }
 0x34e   :  { %682 = vmatpush.msk.msrb.mxu1 %vm284_vm9, %v383_v41 }
 0x34f   :  { %v438_v44 = vpop.f32.mrf.mxu3  ;;  %v575_v33 = vpop.permute.xlu1 %574  ;;  %v667_v41 = vmul.f32 -1.442695, %v143_v39 }
 0x350   :  { %405 = vmatpush.msrb.mxu1 %v382_v43 }
 0x351   :  { %683 = vmatmul.msk.f32.vlgmr.msrb.gmra.mxu1 %vm210_vm7, %v671_v61  ;;  %728 = vpow2.f32 %v667_v41 }
 0x357   :  { %v441_v45 = vpop.f32.mrf.mxu3  ;;  %v729_v43 = vpop.eup %728 }
 0x358   :  { %686 = vmatpush.msk.msrb.mxu0 %vm284_vm9, %v441_v45  ;;  %v151_v45 = vadd.f32 1.0, %v729_v43 }
 0x35a   :  { %468 = vmatpush.msrb.mxu0 %v438_v44  ;;  %v164_v56 = vand.u32 2147483648, %v151_v45  ;;  %v162_v59 = vand.u32 2147483647, %v151_v45 }
 0x35b   :  { %687 = vmatmul.msk.f32.vlgmr.msrb.gmra.mxu0 %vm210_vm7, %v969_v30 }
 0x35c   :  { %v165_v60 = vor.u32 1.1754944e-38, %v164_v56 }
 0x363   :  { %688 = vmatmul.msk.f32.gmra.mxu0 %vm210_vm7, %v976_v20 }
 0x37a   :  { %v135_v38 = vpop.xlane.xlu1 %134 }
 0x37b   :  { %v144_v40 = vadd.f32 %v141_v37, %v135_v38 }
 0x37d   :  { %v668_v42 = vmul.f32 -1.442695, %v144_v40 }
 0x37f   :  { %730 = vpow2.f32 %v668_v42 }
 0x380   :  { %732 = vrcp.f32 %v151_v45 }
 0x385   :  { %v731_v44 = vpop.eup %730 }
 0x386   :  { %v152_v46 = vadd.f32 1.0, %v731_v44  ;;  %v733_v47 = vpop.eup %732 }
 0x387   :  { %v154_v49 = vmul.f32 %v733_v47, %v151_v45  ;;  %vm159_vm2 = vweird.f32 %v733_v47 }
 0x388   :  { %734 = vrcp.f32 %v152_v46  ;;  %vm173_vm3 = vweird.f32 %v152_v46  ;;  %v179_v57 = vand.u32 2147483648, %v152_v46  ;;  %v177_v1 = vand.u32 2147483647, %v152_v46 }
 0x389   :  { %v155_v51 = vsub.f32 1.0, %v154_v49 }
 0x38a   :  { %v180_v61 = vor.u32 1.1754944e-38, %v179_v57  ;;  %vm178_vm8 = vcmp.eq.f32.partialorder %v177_v1, 8.507059e+37 }
 0x38b   :  { %v156_v53 = vmul.f32 %v733_v47, %v155_v51 }
 0x38d   :  { %v157_v58 = vadd.f32 %v733_v47, %v156_v53 }
 0x38e   :  { %v735_v48 = vpop.eup %734 }
 0x38f   :  { %v169_v50 = vmul.f32 %v735_v48, %v152_v46  ;;  %vm174_vm4 = vweird.f32 %v735_v48 }
 0x390   :  { %vm175_vm6 = vmor %vm173_vm3, %vm174_vm4 }
 0x391   :  { %v170_v52 = vsub.f32 1.0, %v169_v50 }
 0x393   :  { %v171_v54 = vmul.f32 %v735_v48, %v170_v52 }
 0x395   :  { %v172_v26 = vadd.f32 %v735_v48, %v171_v54 }
 0x3ce   :  { %v407_v10 = vpop.f32.mrf.mxu1 }
 0x3cf   :  { %411 = vst.msk [vmem:[#allocation3] sm:$0x1] %vm410_vm1, %v407_v10 }
 0x3d8   :  { %v470_v0 = vpop.f32.mrf.mxu0 }
 0x3d9   :  { %v476_v2 = vmul.f32 %v725_v63, %v470_v0  ;;  %v640_v0 = vadd.s32 4294967293, %v1006_v55 }
 0x3db   :  { %v478_v3 = vadd.f32 %v949_v11, %v476_v2 }
 0x3dd   :  { %v480_v4 = vmax.f32 %v478_v3, 0.0 }
 0x3df   :  { %689 = vmatmul.msk.f32.vlgmr.msrb.gmra.mxu2 %vm58_vm0, %v480_v4 }
 0x3e0   :  { %v473_v6 = vpop.f32.mrf.mxu0 }
 0x3e1   :  { %v477_v7 = vmul.f32 %v727_v5, %v473_v6 }
 0x3e3   :  { %v479_v8 = vadd.f32 %v949_v11, %v477_v7  ;;  %v582_v11 = vld [vmem:[%s1075_s14 + $0x18] sm:$0xff] }
 0x3e4   :  { %625 = vmatpush.msra.mxu2 %v582_v11 }
 0x3e5   :  { %v481_v9 = vmax.f32 %v479_v8, 0.0 }
 0x3e6   :  { %626 = vmatpush.msra.mxu2 %v581_v28 }
 0x3e7   :  { %690 = vmatmul.msk.f32.gmra.mxu2 %vm58_vm0, %v481_v9 }
 0x3e8   :  { %627 = vmatpush.msra.mxu2 %v580_v29 }
 0x3ea   :  { %628 = vmatpush.msra.mxu2 %v579_v16 }
 0x3ef   :  { %697 = vmatmul.msk.f32.vlgmr.msra.gmra.mxu2 %vm58_vm0, %v578_v17 }
 0x462   :  { %v505_v12 = vpop.f32.mrf.mxu2 }
 0x46a   :  { %v508_v13 = vpop.f32.mrf.mxu2 }
 0x46b   :  { %691 = vmatpush.msk.msra.mxu1 %vm284_vm9, %v508_v13 }
 0x46d   :  { %529 = vmatpush.msra.mxu1 %v505_v12 }
 0x46e   :  { %692 = vmatmul.msk.f32.vlgmr.msra.gmra.mxu1 %vm210_vm7, %v969_v30  ;;  %v586_v30 = vld [vmem:[%s1075_s14 + $0x38] sm:$0xff] }
 0x46f   :  { %602 = vmatpush.msra.mxu0 %v586_v30 }
 0x472   :  { %v630_v4 = vpop.f32.mrf.mxu2 }
 0x476   :  { %693 = vmatmul.msk.f32.gmra.mxu1 %vm210_vm7, %v976_v20  ;;  %v585_v20 = vld [vmem:[%s1075_s14 + $0x30] sm:$0xff] }
 0x477   :  { %603 = vmatpush.msra.mxu0 %v585_v20 }
 0x479   :  { %604 = vmatpush.msra.mxu0 %v584_v22 }
 0x47b   :  { %605 = vmatpush.msra.mxu0 %v583_v31 }
 0x4eb   :  { %v531_v14 = vpop.f32.mrf.mxu1 }
 0x4ec   :  { %v537_v15 = vmul.f32 %v725_v63, %v531_v14  ;;  %v176_v63 = vsel %vm175_vm6, %v735_v48, %v172_v26 }
 0x4ed   :  { %v181_v3 = vsel %vm178_vm8, %v180_v61, %v176_v63 }
 0x4ee   :  { %v539_v21 = vadd.f32 %v986_v34, %v537_v15  ;;  %v642_v8 = vperm.slane %v181_v3, %v640_v0 }
 0x4f0   :  { %v541_v25 = vmax.f32 %v539_v21, 0.0 }
 0x4f3   :  { %v534_v18 = vpop.f32.mrf.mxu1 }
 0x4f4   :  { %v538_v19 = vmul.f32 %v727_v5, %v534_v18  ;;  %v711_v5 = vld [vmem:[%s1076_s15] ss:$0 sm:$0xff] }
 0x4f6   :  { %v540_v23 = vadd.f32 %v986_v34, %v538_v19 }
 0x4f8   :  { %v542_v24 = vmax.f32 %v540_v23, 0.0 }
 0x4fa   :  { %694 = vmatpush.msk.msra.mxu3 %vm284_vm9, %v542_v24  ;;  %vm643_vm9 = vcmask 1041409  }
 0x4fc   :  { %564 = vmatpush.msra.mxu3 %v541_v25 }
 0x4fd   :  { %695 = vmatmul.msk.f32.vlgmr.msra.gmra.mxu3 %vm210_vm7, %v543_v27  ;;  %vm163_vm7 = vcmp.eq.f32.partialorder %v162_v59, 8.507059e+37 }
 0x580   :  { %v566_v32 = vpop.f32.mrf.mxu3 }
 0x581   :  { %569 = vst.msk [vmem:[#allocation3 + $0x1] sm:$0x1] %vm410_vm1, %v566_v32 }
 0x588   :  { %v570_v34 = vld [vmem:[#allocation3] sm:$0x3] }
 0x589   :  { %v577_v35 = vmul.f32 %v575_v33, %v570_v34 }
 0x58b   :  { %696 = vmatmul.msk.f32.vlgmr.msra.gmra.mxu0 %vm58_vm0, %v577_v35  ;;  %vm158_vm0 = vweird.f32 %v151_v45 }
 0x58c   :  { %vm160_vm5 = vmor %vm158_vm0, %vm159_vm2 }
 0x58d   :  { %v161_v62 = vsel %vm160_vm5, %v733_v47, %v157_v58 }
 0x58e   :  { %v166_v2 = vsel %vm163_vm7, %v165_v60, %v161_v62 }
 0x58f   :  { %v641_v7 = vperm.slane %v166_v2, %v640_v0 }
 0x591   :  { %v644_v10 = vsel %vm643_vm9, %v642_v8, %v641_v7 }
 0x608   :  { %v607_v6 = vpop.f32.mrf.mxu0 }
 0x609   :  { %v631_v9 = vadd.f32 %v630_v4, %v607_v6 }
 0x60b   :  { %v637_v55 = vadd.f32 %v711_v5, %v631_v9 }
 0x60d   :  { %v647_v12 = vsel %vm646_vm10, %v637_v55, %v644_v10 }
 0x60e   :  { %v649_v13 = vsel %vm648_vm11, %v647_v12, 0.0 }
 0x60f   :  { %650 = vst [vmem:[#allocation5] sm:$0x3] %v649_v13 }
 0x610   :  { %661 = dma.vmem_to_hbm [thread:$0]  %s657_s8, 32, %s659_s23, [#allocation6]  }
 0x611   :  { %760 = dma.done.wait [#allocation6], 32  }
 0x612   :  { %761 = vsyncadd [#allocation6], 4294967264 }
 0x613   :  { %666 = vsyncpa [#allocation6], 1 }

</bundles_post_ra>
